<compile_context>
chip_gen: v7x
topology: tpu7x:2x2x1
jax: 0.10.0
libtpu: 0.0.40
codegen_flags: <defaults>
</compile_context>

<pallas_src>
import functools

import jax
import jax.numpy as jnp
from jax import lax
from jax.experimental import pallas as pl
from jax.experimental.pallas import tpu as pltpu


def _round_up(x, m):
    return ((int(x) + m - 1) // m) * m


def _padded_vmem_bytes(shape, dtype):
    """Approximate VMEM footprint honoring (8,128) tiling / lane padding / sublane packing."""
    itemsize = jnp.dtype(dtype).itemsize
    if len(shape) == 0:
        return 4
    if len(shape) == 1:
        return _round_up(shape[0] * itemsize, 512)
    sub = 8 * max(1, 4 // itemsize)          # f32 -> 8, bf16 -> 16, int8 -> 32 sublanes per tile
    lead = 1
    for d in shape[:-2]:
        lead *= int(d)
    return lead * _round_up(shape[-2], sub) * _round_up(shape[-1], 128) * itemsize


def _cnn_kernel(x_ref, w_ref, b_ref, wfc_ref, bfc_ref, out_ref, *, k2, pool1, pool2):
    """Fused conv1+conv2 -> bias -> ReLU -> running max-pool -> FC -> sigmoid (batch on lanes).

    x_ref  : (s_pad, TB, E)   activations, seq-first (batch on sublanes, features on lanes)
    w_ref  : (2F, k2*E)       conv1 taps zero-padded to k2 taps + conv2, flattened im2col weight
    b_ref  : (2F, 1)          [b1, b2]                         (f32, sublane vector)
    wfc_ref: (1, 4F)          [wfc[:F], 0, 0, wfc[F:]]         (f32)
    bfc_ref: (1,)             fc bias (SMEM scalar)
    out_ref: (1, TB)          lane-dense sigmoid output (batch on the lane axis)
    """
    w_t = w_ref[...]
    bias = b_ref[...]
    nb = x_ref.shape[1]
    two_f = w_t.shape[0]

    def relu_conv(l):
        # im2col window for ONE conv output position: (TB, k2*E), batch on sublanes.
        win = jnp.concatenate([x_ref[l + kk] for kk in range(k2)], axis=-1)
        # (2F, k2*E) x (TB, k2*E)^T -> (2F, TB): batch lands on the lane axis (lane-dense).
        acc = lax.dot_general(w_t, win, (((1,), (1,)), ((), ())),
                              preferred_element_type=jnp.float32)
        return jnp.maximum(acc + bias, 0.0)        # (2F,1) lane broadcast bias; f32 ReLU

    def step(l, m):
        return jnp.maximum(m, relu_conv(l))

    # Running max over conv positions; ReLU output is >= 0 so a zero init is exact.
    m0 = jnp.zeros((two_f, nb), jnp.float32)
    pb = lax.fori_loop(0, pool2, step, m0, unroll=pool2 <= 8)                  # short window
    pa = lax.fori_loop(pool2, pool1, step, pb, unroll=(pool1 - pool2) <= 8)    # prefix reused

    # Stacked pooled features (4F, TB); out-of-branch rows are killed by zero FC weights.
    feat = jnp.concatenate([pa, pb], axis=0)
    logits = lax.dot_general(wfc_ref[...], feat, (((1,), (0,)), ((), ())),
                             preferred_element_type=jnp.float32) + bfc_ref[0]
    out_ref[...] = jax.nn.sigmoid(logits)          # (1, TB), lane-dense store


def cnn_forward(tokens, emb, w1, b1, w2, b2, wfc, bfc, length0,
                *, compute_dtype=jnp.bfloat16, block_b=None):
    """tokens: (S, B) int32; emb: (V, E); w1: (K1, E, F); w2: (K2, E, F); wfc: (E, 1); bfc: (1,)."""
    S, B = tokens.shape
    E = emb.shape[1]
    F = w1.shape[2]
    k1, k2 = w1.shape[0], w2.shape[0]
    assert k1 <= k2 and 2 * F == E, "module requires filter1 <= filter2 and 2*n_filters == embedding_dim"

    pool1 = int(length0) - 1           # max_pool1d window for the conv1 branch
    pool2 = int(length0) - 3           # max_pool1d window for the conv2 branch
    assert 1 <= pool2 < pool1
    assert pool1 <= S - k1 + 1 and pool2 <= S - k2 + 1
    # TODO(synk): like the PyTorch forward, this assumes each branch yields a single pooled
    # position (conv_len // pool_window == 1) and per-example lengths beyond lengths[0] are ignored.

    s_pad = max(S, pool1 + k2 - 1)     # pad seq so every (zero-weighted) tap read is in-bounds

    # ---- device-aware tiling / VMEM budget -------------------------------------------------
    try:
        kind = jax.devices()[0].device_kind.lower()
    except Exception:
        kind = ""
    is_v5e = ("v5e" in kind) or ("v5 lite" in kind) or ("v5lite" in kind)
    try:
        vmem_cap = int(getattr(pltpu.get_tpu_info(), "vmem_capacity_bytes", 0)) or (64 << 20)
    except Exception:
        vmem_cap = 64 << 20                      # conservative fallback = v7x per-TC capacity
    budget = max(vmem_cap - (8 << 20), 16 << 20)  # headroom for compiler-internal scratch

    def vmem_estimate(bb):
        x_blk = _padded_vmem_bytes((s_pad, bb, E), compute_dtype)
        tmp = (_padded_vmem_bytes((bb, k2 * E), compute_dtype)           # per-position window
               + 3 * _padded_vmem_bytes((2 * F, bb), jnp.float32)        # acc / h / running max
               + _padded_vmem_bytes((4 * F, bb), jnp.float32))           # stacked features
        const = (_padded_vmem_bytes((2 * F, k2 * E), compute_dtype)
                 + _padded_vmem_bytes((2 * F, 1), jnp.float32)
                 + _padded_vmem_bytes((1, 4 * F), jnp.float32))
        out_blk = _padded_vmem_bytes((1, bb), jnp.float32)
        return 2 * x_blk + 2 * out_blk + tmp + const + (1 << 20)

    if block_b is None:
        cands = []
        if (not is_v5e) and B >= 256 and B % 256 == 0:
            cands.append(256)                    # matches the 256-wide MXU on v6e/v7x
        if B >= 128:
            cands.append(128)
        if not cands:
            cands = [B]                          # tiny batch: one full-extent block
    else:
        cands = [int(block_b)]
    block_b = cands[-1]
    for cand in cands:
        if 2 * vmem_estimate(cand) <= budget:
            block_b = cand
            break
    # TODO(synk): if even the smallest block misses the budget (very long sequences), add a
    # second "arbitrary" grid axis over the conv-position axis with a running-max VMEM scratch.
    vmem_limit = int(min(budget, max(2 * vmem_estimate(block_b), 16 << 20)))

    b_pad = _round_up(B, block_b)
    n_b = b_pad // block_b

    # ---- embedding gather (plain JAX), cast-before-gather, pad token ids not activations ----
    tok = tokens.astype(jnp.int32)
    if s_pad > S or b_pad > B:
        tok = jnp.pad(tok, ((0, s_pad - S), (0, b_pad - B)))      # token-0 pad rows/cols
    x = emb.astype(compute_dtype)[tok]                            # (s_pad, b_pad, E), seq-first
    # TODO(synk): fuse this gather into the kernel (VMEM-resident table + scalar-prefetched ids)
    # to remove the remaining HBM round trip; needs an efficient vectorized row gather.

    # ---- fused weights ----------------------------------------------------------------------
    w_full = jnp.zeros((k2, E, 2 * F), jnp.float32)
    w_full = w_full.at[:k1, :, :F].set(w1.astype(jnp.float32))    # conv1 zero-padded to k2 taps
    w_full = w_full.at[:, :, F:].set(w2.astype(jnp.float32))
    w_t = w_full.reshape(k2 * E, 2 * F).T.astype(compute_dtype)   # (2F, k2*E)
    b_comb = jnp.concatenate([b1, b2]).reshape(2 * F, 1).astype(jnp.float32)
    zeros_f = jnp.zeros((F,), jnp.float32)
    wfc_all = jnp.concatenate([wfc[:F, 0], zeros_f, zeros_f, wfc[F:, 0]]
                              ).reshape(1, 4 * F).astype(jnp.float32)
    bfc_s = bfc.reshape(1).astype(jnp.float32)

    kernel = functools.partial(_cnn_kernel, k2=k2, pool1=pool1, pool2=pool2)

    out = pl.pallas_call(
        kernel,
        out_shape=jax.ShapeDtypeStruct((1, b_pad), jnp.float32),
        grid=(n_b,),
        in_specs=[
            pl.BlockSpec((s_pad, block_b, E), lambda i: (0, i, 0)),   # activations (seq-first)
            pl.BlockSpec((2 * F, k2 * E), lambda i: (0, 0)),          # fused conv weight
            pl.BlockSpec((2 * F, 1), lambda i: (0, 0)),               # fused conv bias (sublane)
            pl.BlockSpec((1, 4 * F), lambda i: (0, 0)),               # merged, zero-masked FC w
            pl.BlockSpec(memory_space=pltpu.MemorySpace.SMEM),        # fc bias (scalar)
        ],
        out_specs=pl.BlockSpec((1, block_b), lambda i: (0, i)),       # lane-dense output
        compiler_params=pltpu.CompilerParams(
            dimension_semantics=("parallel",),
            vmem_limit_bytes=vmem_limit),
    )(x, w_t, b_comb, wfc_all, bfc_s)

    return out[:, :B].T                                               # (B, 1)


def cnn_reference(tokens, emb, w1, b1, w2, b2, wfc, bfc, length0):
    """Pure-JAX reference mirroring the PyTorch forward (for a sanity check)."""
    x_emb = emb[tokens]                                # (S, B, E)
    x = jnp.transpose(x_emb, (1, 0, 2))                # (B, S, E)

    def conv1d(xs, w, b):                              # w: (K, E, F)
        k = w.shape[0]
        lc = xs.shape[1] - k + 1
        out = jnp.zeros((xs.shape[0], lc, w.shape[2]), jnp.float32)
        for kk in range(k):
            out = out + jnp.einsum('bse,ef->bsf', xs[:, kk:kk + lc, :], w[kk])
        return out + b[None, None, :]

    h1 = jnp.maximum(conv1d(x, w1, b1), 0.0)
    h2 = jnp.maximum(conv1d(x, w2, b2), 0.0)
    p1 = jnp.max(h1[:, :int(length0) - 1, :], axis=1)
    p2 = jnp.max(h2[:, :int(length0) - 3, :], axis=1)
    feat = jnp.concatenate([p1, p2], axis=1)
    return jax.nn.sigmoid(feat @ wfc + bfc[None, :])


if __name__ == "__main__":
    # Small, consistent shapes: 2*n_filters == embedding_dim, filter_sizes=(2,4), lengths[0]==S.
    V, E, F, S, B = 50, 32, 16, 8, 2
    K1, K2 = 2, 4
    lengths = [S] * B

    key = jax.random.PRNGKey(0)
    k_emb, k_tok, k_w1, k_b1, k_w2, k_b2, k_wfc, k_bfc = jax.random.split(key, 8)

    emb = jax.random.normal(k_emb, (V, E), jnp.float32) * 0.5          # pretrained embedding table
    tokens = jax.random.randint(k_tok, (S, B), 0, V, jnp.int32)        # (seq, batch) token ids
    w1 = jax.random.normal(k_w1, (K1, E, F), jnp.float32) * 0.1        # conv1 weight (K, E, F)
    b1 = jax.random.normal(k_b1, (F,), jnp.float32) * 0.1
    w2 = jax.random.normal(k_w2, (K2, E, F), jnp.float32) * 0.1        # conv2 weight (K, E, F)
    b2 = jax.random.normal(k_b2, (F,), jnp.float32) * 0.1
    wfc = jax.random.normal(k_wfc, (E, 1), jnp.float32) * 0.1          # fc1 weight (E, 1)
    bfc = jax.random.normal(k_bfc, (1,), jnp.float32) * 0.1

    ref = cnn_reference(tokens, emb, w1, b1, w2, b2, wfc, bfc, lengths[0])

    # f32 path (tight tolerance).
    out_f32 = jax.block_until_ready(
        cnn_forward(tokens, emb, w1, b1, w2, b2, wfc, bfc, lengths[0],
                    compute_dtype=jnp.float32))
    assert out_f32.shape == (B, 1)
    assert jnp.allclose(out_f32, ref, atol=1e-4, rtol=1e-4), (out_f32, ref)

    # Default path: bf16 activations / conv weights with f32 accumulation (all generations).
    out_bf16 = jax.block_until_ready(
        cnn_forward(tokens, emb, w1, b1, w2, b2, wfc, bfc, lengths[0]))
    assert out_bf16.shape == (B, 1)
    assert jnp.allclose(out_bf16, ref, atol=2e-2, rtol=2e-2), (out_bf16, ref)

    print("KERNEL_OK")
</pallas_src>

<mosaic_0001>
module attributes {stable_mosaic.version = 11 : i64} {
  func.func @_cnn_kernel(%arg0: i32, %arg1: memref<10x2x32xf32, #tpu.memory_space<vmem>>, %arg2: memref<32x128xf32, #tpu.memory_space<vmem>>, %arg3: memref<32x1xf32, #tpu.memory_space<vmem>>, %arg4: memref<1x64xf32, #tpu.memory_space<vmem>>, %arg5: memref<1xf32, #tpu.memory_space<smem>>, %arg6: memref<1x2xf32, #tpu.memory_space<vmem>>) attributes {dimension_semantics = [#tpu.dimension_semantics<parallel>], iteration_bounds = array<i64: 1>, scalar_prefetch = 0 : i64, scratch_operands = 0 : i64, tpu.core_type = #tpu.core_type<tc>, window_params = [{transform_indices = @transform_0, window_bounds = array<i64: 10, 2, 32>}, {pipeline_mode = #tpu.pipeline_mode<synchronous>, transform_indices = @transform_1, window_bounds = array<i64: 32, 128>}, {pipeline_mode = #tpu.pipeline_mode<synchronous>, transform_indices = @transform_2, window_bounds = array<i64: 32, 1>}, {pipeline_mode = #tpu.pipeline_mode<synchronous>, transform_indices = @transform_3, window_bounds = array<i64: 1, 64>}, {transform_indices = @transform_4, window_bounds = array<i64: 1>}, {transform_indices = @transform_5, window_bounds = array<i64: 1, 2>}]} {
    %c0 = arith.constant 0 : index
    %c0_0 = arith.constant 0 : index
    %0 = vector.load %arg2[%c0, %c0_0] : memref<32x128xf32, #tpu.memory_space<vmem>>, vector<32x128xf32>
    %c0_1 = arith.constant 0 : index
    %c0_2 = arith.constant 0 : index
    %1 = vector.load %arg3[%c0_1, %c0_2] : memref<32x1xf32, #tpu.memory_space<vmem>>, vector<32x1xf32>
    %cst = arith.constant 0.000000e+00 : f32
    %2 = vector.broadcast %cst : f32 to vector<32x2xf32>
    %c0_i32 = arith.constant 0 : i32
    %c0_i32_3 = arith.constant 0 : i32
    %3 = arith.addi %c0_i32, %c0_i32_3 : i32
    %4 = arith.index_cast %3 : i32 to index
    %c0_4 = arith.constant 0 : index
    %c0_5 = arith.constant 0 : index
    %5 = vector.load %arg1[%4, %c0_4, %c0_5] : memref<10x2x32xf32, #tpu.memory_space<vmem>>, vector<1x2x32xf32>
    %6 = vector.shape_cast %5 : vector<1x2x32xf32> to vector<2x32xf32>
    %c1_i32 = arith.constant 1 : i32
    %7 = arith.addi %c0_i32, %c1_i32 : i32
    %8 = arith.index_cast %7 : i32 to index
    %c0_6 = arith.constant 0 : index
    %c0_7 = arith.constant 0 : index
    %9 = vector.load %arg1[%8, %c0_6, %c0_7] : memref<10x2x32xf32, #tpu.memory_space<vmem>>, vector<1x2x32xf32>
    %10 = vector.shape_cast %9 : vector<1x2x32xf32> to vector<2x32xf32>
    %c2_i32 = arith.constant 2 : i32
    %11 = arith.addi %c0_i32, %c2_i32 : i32
    %12 = arith.index_cast %11 : i32 to index
    %c0_8 = arith.constant 0 : index
    %c0_9 = arith.constant 0 : index
    %13 = vector.load %arg1[%12, %c0_8, %c0_9] : memref<10x2x32xf32, #tpu.memory_space<vmem>>, vector<1x2x32xf32>
    %14 = vector.shape_cast %13 : vector<1x2x32xf32> to vector<2x32xf32>
    %c3_i32 = arith.constant 3 : i32
    %15 = arith.addi %c0_i32, %c3_i32 : i32
    %16 = arith.index_cast %15 : i32 to index
    %c0_10 = arith.constant 0 : index
    %c0_11 = arith.constant 0 : index
    %17 = vector.load %arg1[%16, %c0_10, %c0_11] : memref<10x2x32xf32, #tpu.memory_space<vmem>>, vector<1x2x32xf32>
    %18 = vector.shape_cast %17 : vector<1x2x32xf32> to vector<2x32xf32>
    %19 = tpu.concatenate %6, %10, %14, %18 in 1 : vector<2x32xf32>, vector<2x32xf32>, vector<2x32xf32>, vector<2x32xf32> -> vector<2x128xf32>
    %cst_12 = arith.constant dense<0.000000e+00> : vector<32x2xf32>
    %20 = tpu.matmul %0, %19, %cst_12 {dimension_numbers = #tpu.dot_dimension_numbers<[1], [1], [0], [0], [0, 0, 1, 0], [], []>} : vector<32x128xf32>, vector<2x128xf32>, vector<32x2xf32> -> vector<32x2xf32>
    %21 = vector.broadcast %1 : vector<32x1xf32> to vector<32x2xf32>
    %22 = arith.addf %20, %21 : vector<32x2xf32>
    %cst_13 = arith.constant 0.000000e+00 : f32
    %23 = vector.broadcast %cst_13 : f32 to vector<32x2xf32>
    %24 = arith.maximumf %22, %23 : vector<32x2xf32>
    %25 = arith.maximumf %2, %24 : vector<32x2xf32>
    %c1_i32_14 = arith.constant 1 : i32
    %c0_i32_15 = arith.constant 0 : i32
    %26 = arith.addi %c1_i32_14, %c0_i32_15 : i32
    %27 = arith.index_cast %26 : i32 to index
    %c0_16 = arith.constant 0 : index
    %c0_17 = arith.constant 0 : index
    %28 = vector.load %arg1[%27, %c0_16, %c0_17] : memref<10x2x32xf32, #tpu.memory_space<vmem>>, vector<1x2x32xf32>
    %29 = vector.shape_cast %28 : vector<1x2x32xf32> to vector<2x32xf32>
    %c1_i32_18 = arith.constant 1 : i32
    %30 = arith.addi %c1_i32_14, %c1_i32_18 : i32
    %31 = arith.index_cast %30 : i32 to index
    %c0_19 = arith.constant 0 : index
    %c0_20 = arith.constant 0 : index
    %32 = vector.load %arg1[%31, %c0_19, %c0_20] : memref<10x2x32xf32, #tpu.memory_space<vmem>>, vector<1x2x32xf32>
    %33 = vector.shape_cast %32 : vector<1x2x32xf32> to vector<2x32xf32>
    %c2_i32_21 = arith.constant 2 : i32
    %34 = arith.addi %c1_i32_14, %c2_i32_21 : i32
    %35 = arith.index_cast %34 : i32 to index
    %c0_22 = arith.constant 0 : index
    %c0_23 = arith.constant 0 : index
    %36 = vector.load %arg1[%35, %c0_22, %c0_23] : memref<10x2x32xf32, #tpu.memory_space<vmem>>, vector<1x2x32xf32>
    %37 = vector.shape_cast %36 : vector<1x2x32xf32> to vector<2x32xf32>
    %c3_i32_24 = arith.constant 3 : i32
    %38 = arith.addi %c1_i32_14, %c3_i32_24 : i32
    %39 = arith.index_cast %38 : i32 to index
    %c0_25 = arith.constant 0 : index
    %c0_26 = arith.constant 0 : index
    %40 = vector.load %arg1[%39, %c0_25, %c0_26] : memref<10x2x32xf32, #tpu.memory_space<vmem>>, vector<1x2x32xf32>
    %41 = vector.shape_cast %40 : vector<1x2x32xf32> to vector<2x32xf32>
    %42 = tpu.concatenate %29, %33, %37, %41 in 1 : vector<2x32xf32>, vector<2x32xf32>, vector<2x32xf32>, vector<2x32xf32> -> vector<2x128xf32>
    %cst_27 = arith.constant dense<0.000000e+00> : vector<32x2xf32>
    %43 = tpu.matmul %0, %42, %cst_27 {dimension_numbers = #tpu.dot_dimension_numbers<[1], [1], [0], [0], [0, 0, 1, 0], [], []>} : vector<32x128xf32>, vector<2x128xf32>, vector<32x2xf32> -> vector<32x2xf32>
    %44 = vector.broadcast %1 : vector<32x1xf32> to vector<32x2xf32>
    %45 = arith.addf %43, %44 : vector<32x2xf32>
    %cst_28 = arith.constant 0.000000e+00 : f32
    %46 = vector.broadcast %cst_28 : f32 to vector<32x2xf32>
    %47 = arith.maximumf %45, %46 : vector<32x2xf32>
    %48 = arith.maximumf %25, %47 : vector<32x2xf32>
    %c2_i32_29 = arith.constant 2 : i32
    %c0_i32_30 = arith.constant 0 : i32
    %49 = arith.addi %c2_i32_29, %c0_i32_30 : i32
    %50 = arith.index_cast %49 : i32 to index
    %c0_31 = arith.constant 0 : index
    %c0_32 = arith.constant 0 : index
    %51 = vector.load %arg1[%50, %c0_31, %c0_32] : memref<10x2x32xf32, #tpu.memory_space<vmem>>, vector<1x2x32xf32>
    %52 = vector.shape_cast %51 : vector<1x2x32xf32> to vector<2x32xf32>
    %c1_i32_33 = arith.constant 1 : i32
    %53 = arith.addi %c2_i32_29, %c1_i32_33 : i32
    %54 = arith.index_cast %53 : i32 to index
    %c0_34 = arith.constant 0 : index
    %c0_35 = arith.constant 0 : index
    %55 = vector.load %arg1[%54, %c0_34, %c0_35] : memref<10x2x32xf32, #tpu.memory_space<vmem>>, vector<1x2x32xf32>
    %56 = vector.shape_cast %55 : vector<1x2x32xf32> to vector<2x32xf32>
    %c2_i32_36 = arith.constant 2 : i32
    %57 = arith.addi %c2_i32_29, %c2_i32_36 : i32
    %58 = arith.index_cast %57 : i32 to index
    %c0_37 = arith.constant 0 : index
    %c0_38 = arith.constant 0 : index
    %59 = vector.load %arg1[%58, %c0_37, %c0_38] : memref<10x2x32xf32, #tpu.memory_space<vmem>>, vector<1x2x32xf32>
    %60 = vector.shape_cast %59 : vector<1x2x32xf32> to vector<2x32xf32>
    %c3_i32_39 = arith.constant 3 : i32
    %61 = arith.addi %c2_i32_29, %c3_i32_39 : i32
    %62 = arith.index_cast %61 : i32 to index
    %c0_40 = arith.constant 0 : index
    %c0_41 = arith.constant 0 : index
    %63 = vector.load %arg1[%62, %c0_40, %c0_41] : memref<10x2x32xf32, #tpu.memory_space<vmem>>, vector<1x2x32xf32>
    %64 = vector.shape_cast %63 : vector<1x2x32xf32> to vector<2x32xf32>
    %65 = tpu.concatenate %52, %56, %60, %64 in 1 : vector<2x32xf32>, vector<2x32xf32>, vector<2x32xf32>, vector<2x32xf32> -> vector<2x128xf32>
    %cst_42 = arith.constant dense<0.000000e+00> : vector<32x2xf32>
    %66 = tpu.matmul %0, %65, %cst_42 {dimension_numbers = #tpu.dot_dimension_numbers<[1], [1], [0], [0], [0, 0, 1, 0], [], []>} : vector<32x128xf32>, vector<2x128xf32>, vector<32x2xf32> -> vector<32x2xf32>
    %67 = vector.broadcast %1 : vector<32x1xf32> to vector<32x2xf32>
    %68 = arith.addf %66, %67 : vector<32x2xf32>
    %cst_43 = arith.constant 0.000000e+00 : f32
    %69 = vector.broadcast %cst_43 : f32 to vector<32x2xf32>
    %70 = arith.maximumf %68, %69 : vector<32x2xf32>
    %71 = arith.maximumf %48, %70 : vector<32x2xf32>
    %c3_i32_44 = arith.constant 3 : i32
    %c0_i32_45 = arith.constant 0 : i32
    %72 = arith.addi %c3_i32_44, %c0_i32_45 : i32
    %73 = arith.index_cast %72 : i32 to index
    %c0_46 = arith.constant 0 : index
    %c0_47 = arith.constant 0 : index
    %74 = vector.load %arg1[%73, %c0_46, %c0_47] : memref<10x2x32xf32, #tpu.memory_space<vmem>>, vector<1x2x32xf32>
    %75 = vector.shape_cast %74 : vector<1x2x32xf32> to vector<2x32xf32>
    %c1_i32_48 = arith.constant 1 : i32
    %76 = arith.addi %c3_i32_44, %c1_i32_48 : i32
    %77 = arith.index_cast %76 : i32 to index
    %c0_49 = arith.constant 0 : index
    %c0_50 = arith.constant 0 : index
    %78 = vector.load %arg1[%77, %c0_49, %c0_50] : memref<10x2x32xf32, #tpu.memory_space<vmem>>, vector<1x2x32xf32>
    %79 = vector.shape_cast %78 : vector<1x2x32xf32> to vector<2x32xf32>
    %c2_i32_51 = arith.constant 2 : i32
    %80 = arith.addi %c3_i32_44, %c2_i32_51 : i32
    %81 = arith.index_cast %80 : i32 to index
    %c0_52 = arith.constant 0 : index
    %c0_53 = arith.constant 0 : index
    %82 = vector.load %arg1[%81, %c0_52, %c0_53] : memref<10x2x32xf32, #tpu.memory_space<vmem>>, vector<1x2x32xf32>
    %83 = vector.shape_cast %82 : vector<1x2x32xf32> to vector<2x32xf32>
    %c3_i32_54 = arith.constant 3 : i32
    %84 = arith.addi %c3_i32_44, %c3_i32_54 : i32
    %85 = arith.index_cast %84 : i32 to index
    %c0_55 = arith.constant 0 : index
    %c0_56 = arith.constant 0 : index
    %86 = vector.load %arg1[%85, %c0_55, %c0_56] : memref<10x2x32xf32, #tpu.memory_space<vmem>>, vector<1x2x32xf32>
    %87 = vector.shape_cast %86 : vector<1x2x32xf32> to vector<2x32xf32>
    %88 = tpu.concatenate %75, %79, %83, %87 in 1 : vector<2x32xf32>, vector<2x32xf32>, vector<2x32xf32>, vector<2x32xf32> -> vector<2x128xf32>
    %cst_57 = arith.constant dense<0.000000e+00> : vector<32x2xf32>
    %89 = tpu.matmul %0, %88, %cst_57 {dimension_numbers = #tpu.dot_dimension_numbers<[1], [1], [0], [0], [0, 0, 1, 0], [], []>} : vector<32x128xf32>, vector<2x128xf32>, vector<32x2xf32> -> vector<32x2xf32>
    %90 = vector.broadcast %1 : vector<32x1xf32> to vector<32x2xf32>
    %91 = arith.addf %89, %90 : vector<32x2xf32>
    %cst_58 = arith.constant 0.000000e+00 : f32
    %92 = vector.broadcast %cst_58 : f32 to vector<32x2xf32>
    %93 = arith.maximumf %91, %92 : vector<32x2xf32>
    %94 = arith.maximumf %71, %93 : vector<32x2xf32>
    %c4_i32 = arith.constant 4 : i32
    %c0_i32_59 = arith.constant 0 : i32
    %95 = arith.addi %c4_i32, %c0_i32_59 : i32
    %96 = arith.index_cast %95 : i32 to index
    %c0_60 = arith.constant 0 : index
    %c0_61 = arith.constant 0 : index
    %97 = vector.load %arg1[%96, %c0_60, %c0_61] : memref<10x2x32xf32, #tpu.memory_space<vmem>>, vector<1x2x32xf32>
    %98 = vector.shape_cast %97 : vector<1x2x32xf32> to vector<2x32xf32>
    %c1_i32_62 = arith.constant 1 : i32
    %99 = arith.addi %c4_i32, %c1_i32_62 : i32
    %100 = arith.index_cast %99 : i32 to index
    %c0_63 = arith.constant 0 : index
    %c0_64 = arith.constant 0 : index
    %101 = vector.load %arg1[%100, %c0_63, %c0_64] : memref<10x2x32xf32, #tpu.memory_space<vmem>>, vector<1x2x32xf32>
    %102 = vector.shape_cast %101 : vector<1x2x32xf32> to vector<2x32xf32>
    %c2_i32_65 = arith.constant 2 : i32
    %103 = arith.addi %c4_i32, %c2_i32_65 : i32
    %104 = arith.index_cast %103 : i32 to index
    %c0_66 = arith.constant 0 : index
    %c0_67 = arith.constant 0 : index
    %105 = vector.load %arg1[%104, %c0_66, %c0_67] : memref<10x2x32xf32, #tpu.memory_space<vmem>>, vector<1x2x32xf32>
    %106 = vector.shape_cast %105 : vector<1x2x32xf32> to vector<2x32xf32>
    %c3_i32_68 = arith.constant 3 : i32
    %107 = arith.addi %c4_i32, %c3_i32_68 : i32
    %108 = arith.index_cast %107 : i32 to index
    %c0_69 = arith.constant 0 : index
    %c0_70 = arith.constant 0 : index
    %109 = vector.load %arg1[%108, %c0_69, %c0_70] : memref<10x2x32xf32, #tpu.memory_space<vmem>>, vector<1x2x32xf32>
    %110 = vector.shape_cast %109 : vector<1x2x32xf32> to vector<2x32xf32>
    %111 = tpu.concatenate %98, %102, %106, %110 in 1 : vector<2x32xf32>, vector<2x32xf32>, vector<2x32xf32>, vector<2x32xf32> -> vector<2x128xf32>
    %cst_71 = arith.constant dense<0.000000e+00> : vector<32x2xf32>
    %112 = tpu.matmul %0, %111, %cst_71 {dimension_numbers = #tpu.dot_dimension_numbers<[1], [1], [0], [0], [0, 0, 1, 0], [], []>} : vector<32x128xf32>, vector<2x128xf32>, vector<32x2xf32> -> vector<32x2xf32>
    %113 = vector.broadcast %1 : vector<32x1xf32> to vector<32x2xf32>
    %114 = arith.addf %112, %113 : vector<32x2xf32>
    %cst_72 = arith.constant 0.000000e+00 : f32
    %115 = vector.broadcast %cst_72 : f32 to vector<32x2xf32>
    %116 = arith.maximumf %114, %115 : vector<32x2xf32>
    %117 = arith.maximumf %94, %116 : vector<32x2xf32>
    %c5_i32 = arith.constant 5 : i32
    %c5_i32_73 = arith.constant 5 : i32
    %c0_i32_74 = arith.constant 0 : i32
    %118 = arith.addi %c5_i32_73, %c0_i32_74 : i32
    %119 = arith.index_cast %118 : i32 to index
    %c0_75 = arith.constant 0 : index
    %c0_76 = arith.constant 0 : index
    %120 = vector.load %arg1[%119, %c0_75, %c0_76] : memref<10x2x32xf32, #tpu.memory_space<vmem>>, vector<1x2x32xf32>
    %121 = vector.shape_cast %120 : vector<1x2x32xf32> to vector<2x32xf32>
    %c1_i32_77 = arith.constant 1 : i32
    %122 = arith.addi %c5_i32_73, %c1_i32_77 : i32
    %123 = arith.index_cast %122 : i32 to index
    %c0_78 = arith.constant 0 : index
    %c0_79 = arith.constant 0 : index
    %124 = vector.load %arg1[%123, %c0_78, %c0_79] : memref<10x2x32xf32, #tpu.memory_space<vmem>>, vector<1x2x32xf32>
    %125 = vector.shape_cast %124 : vector<1x2x32xf32> to vector<2x32xf32>
    %c2_i32_80 = arith.constant 2 : i32
    %126 = arith.addi %c5_i32_73, %c2_i32_80 : i32
    %127 = arith.index_cast %126 : i32 to index
    %c0_81 = arith.constant 0 : index
    %c0_82 = arith.constant 0 : index
    %128 = vector.load %arg1[%127, %c0_81, %c0_82] : memref<10x2x32xf32, #tpu.memory_space<vmem>>, vector<1x2x32xf32>
    %129 = vector.shape_cast %128 : vector<1x2x32xf32> to vector<2x32xf32>
    %c3_i32_83 = arith.constant 3 : i32
    %130 = arith.addi %c5_i32_73, %c3_i32_83 : i32
    %131 = arith.index_cast %130 : i32 to index
    %c0_84 = arith.constant 0 : index
    %c0_85 = arith.constant 0 : index
    %132 = vector.load %arg1[%131, %c0_84, %c0_85] : memref<10x2x32xf32, #tpu.memory_space<vmem>>, vector<1x2x32xf32>
    %133 = vector.shape_cast %132 : vector<1x2x32xf32> to vector<2x32xf32>
    %134 = tpu.concatenate %121, %125, %129, %133 in 1 : vector<2x32xf32>, vector<2x32xf32>, vector<2x32xf32>, vector<2x32xf32> -> vector<2x128xf32>
    %cst_86 = arith.constant dense<0.000000e+00> : vector<32x2xf32>
    %135 = tpu.matmul %0, %134, %cst_86 {dimension_numbers = #tpu.dot_dimension_numbers<[1], [1], [0], [0], [0, 0, 1, 0], [], []>} : vector<32x128xf32>, vector<2x128xf32>, vector<32x2xf32> -> vector<32x2xf32>
    %136 = vector.broadcast %1 : vector<32x1xf32> to vector<32x2xf32>
    %137 = arith.addf %135, %136 : vector<32x2xf32>
    %cst_87 = arith.constant 0.000000e+00 : f32
    %138 = vector.broadcast %cst_87 : f32 to vector<32x2xf32>
    %139 = arith.maximumf %137, %138 : vector<32x2xf32>
    %140 = arith.maximumf %117, %139 : vector<32x2xf32>
    %c6_i32 = arith.constant 6 : i32
    %c0_i32_88 = arith.constant 0 : i32
    %141 = arith.addi %c6_i32, %c0_i32_88 : i32
    %142 = arith.index_cast %141 : i32 to index
    %c0_89 = arith.constant 0 : index
    %c0_90 = arith.constant 0 : index
    %143 = vector.load %arg1[%142, %c0_89, %c0_90] : memref<10x2x32xf32, #tpu.memory_space<vmem>>, vector<1x2x32xf32>
    %144 = vector.shape_cast %143 : vector<1x2x32xf32> to vector<2x32xf32>
    %c1_i32_91 = arith.constant 1 : i32
    %145 = arith.addi %c6_i32, %c1_i32_91 : i32
    %146 = arith.index_cast %145 : i32 to index
    %c0_92 = arith.constant 0 : index
    %c0_93 = arith.constant 0 : index
    %147 = vector.load %arg1[%146, %c0_92, %c0_93] : memref<10x2x32xf32, #tpu.memory_space<vmem>>, vector<1x2x32xf32>
    %148 = vector.shape_cast %147 : vector<1x2x32xf32> to vector<2x32xf32>
    %c2_i32_94 = arith.constant 2 : i32
    %149 = arith.addi %c6_i32, %c2_i32_94 : i32
    %150 = arith.index_cast %149 : i32 to index
    %c0_95 = arith.constant 0 : index
    %c0_96 = arith.constant 0 : index
    %151 = vector.load %arg1[%150, %c0_95, %c0_96] : memref<10x2x32xf32, #tpu.memory_space<vmem>>, vector<1x2x32xf32>
    %152 = vector.shape_cast %151 : vector<1x2x32xf32> to vector<2x32xf32>
    %c3_i32_97 = arith.constant 3 : i32
    %153 = arith.addi %c6_i32, %c3_i32_97 : i32
    %154 = arith.index_cast %153 : i32 to index
    %c0_98 = arith.constant 0 : index
    %c0_99 = arith.constant 0 : index
    %155 = vector.load %arg1[%154, %c0_98, %c0_99] : memref<10x2x32xf32, #tpu.memory_space<vmem>>, vector<1x2x32xf32>
    %156 = vector.shape_cast %155 : vector<1x2x32xf32> to vector<2x32xf32>
    %157 = tpu.concatenate %144, %148, %152, %156 in 1 : vector<2x32xf32>, vector<2x32xf32>, vector<2x32xf32>, vector<2x32xf32> -> vector<2x128xf32>
    %cst_100 = arith.constant dense<0.000000e+00> : vector<32x2xf32>
    %158 = tpu.matmul %0, %157, %cst_100 {dimension_numbers = #tpu.dot_dimension_numbers<[1], [1], [0], [0], [0, 0, 1, 0], [], []>} : vector<32x128xf32>, vector<2x128xf32>, vector<32x2xf32> -> vector<32x2xf32>
    %159 = vector.broadcast %1 : vector<32x1xf32> to vector<32x2xf32>
    %160 = arith.addf %158, %159 : vector<32x2xf32>
    %cst_101 = arith.constant 0.000000e+00 : f32
    %161 = vector.broadcast %cst_101 : f32 to vector<32x2xf32>
    %162 = arith.maximumf %160, %161 : vector<32x2xf32>
    %163 = arith.maximumf %140, %162 : vector<32x2xf32>
    %c2_i32_102 = arith.constant 2 : i32
    %164 = tpu.concatenate %163, %117 in 0 : vector<32x2xf32>, vector<32x2xf32> -> vector<64x2xf32>
    %c0_103 = arith.constant 0 : index
    %c0_104 = arith.constant 0 : index
    %165 = vector.load %arg4[%c0_103, %c0_104] : memref<1x64xf32, #tpu.memory_space<vmem>>, vector<1x64xf32>
    %cst_105 = arith.constant dense<0.000000e+00> : vector<1x2xf32>
    %166 = tpu.matmul %165, %164, %cst_105 {dimension_numbers = #tpu.dot_dimension_numbers<[1], [0], [0], [1], [0, 0, 1, 1], [], []>} : vector<1x64xf32>, vector<64x2xf32>, vector<1x2xf32> -> vector<1x2xf32>
    %c0_106 = arith.constant 0 : index
    %167 = memref.load %arg5[%c0_106] : memref<1xf32, #tpu.memory_space<smem>>
    %168 = vector.broadcast %167 : f32 to vector<1x2xf32>
    %169 = arith.addf %166, %168 : vector<1x2xf32>
    %170 = arith.negf %169 : vector<1x2xf32>
    %171 = math.exp %170 : vector<1x2xf32>
    %cst_107 = arith.constant 1.000000e+00 : f32
    %172 = vector.broadcast %cst_107 : f32 to vector<1x2xf32>
    %173 = arith.addf %172, %171 : vector<1x2xf32>
    %174 = arith.divf %172, %173 : vector<1x2xf32>
    %c0_108 = arith.constant 0 : index
    %c0_109 = arith.constant 0 : index
    %175 = vector.load %arg6[%c0_108, %c0_109] : memref<1x2xf32, #tpu.memory_space<vmem>>, vector<1x2xf32>
    tpu.vector_store %arg6[%c0_108, %c0_109], %174 {strides = array<i32>} : memref<1x2xf32, #tpu.memory_space<vmem>>, vector<1x2xf32>,
    return
  }
  func.func @transform_0(%arg0: i32) -> (i32, i32, i32) {
    %c0_i32 = arith.constant 0 : i32
    %c0_i32_0 = arith.constant 0 : i32
    %c0_i32_1 = arith.constant 0 : i32
    return %c0_i32, %arg0, %c0_i32_0 : i32, i32, i32
  }
  func.func @transform_1(%arg0: i32) -> (i32, i32) {
    %c0_i32 = arith.constant 0 : i32
    %c0_i32_0 = arith.constant 0 : i32
    %c0_i32_1 = arith.constant 0 : i32
    return %c0_i32, %c0_i32_0 : i32, i32
  }
  func.func @transform_2(%arg0: i32) -> (i32, i32) {
    %c0_i32 = arith.constant 0 : i32
    %c0_i32_0 = arith.constant 0 : i32
    %c0_i32_1 = arith.constant 0 : i32
    return %c0_i32, %c0_i32_0 : i32, i32
  }
  func.func @transform_3(%arg0: i32) -> (i32, i32) {
    %c0_i32 = arith.constant 0 : i32
    %c0_i32_0 = arith.constant 0 : i32
    %c0_i32_1 = arith.constant 0 : i32
    return %c0_i32, %c0_i32_0 : i32, i32
  }
  func.func @transform_4(%arg0: i32) -> i32 {
    %c0_i32 = arith.constant 0 : i32
    %c0_i32_0 = arith.constant 0 : i32
    return %c0_i32 : i32
  }
  func.func @transform_5(%arg0: i32) -> (i32, i32) {
    %c0_i32 = arith.constant 0 : i32
    %c0_i32_0 = arith.constant 0 : i32
    return %c0_i32, %arg0 : i32, i32
  }
}

</mosaic_0001>

<bundles_post_ra>
// kernel: tpu_custom_call.1
= control target key start
LH: loop header
LB: loop body
LE: loop exit
PB: predicated region body
PF: predicated region fallthrough
CT: control target
= control target key end

     0   :  { %11 = vsyncpa [#allocation4], 0  ;;  %s1354_s0 = inlined_call_operand.hbm [shape: f32[10,2,32], index: 0, kind: input, shape index: {}]   ;;  %s1355_s1 = inlined_call_operand.vmem [shape: f32[32,128], index: 1, kind: input, shape index: {}]   ;;  %s1356_s2 = inlined_call_operand.vmem [shape: f32[32,1], index: 2, kind: input, shape index: {}]   ;;  %s1357_s3 = inlined_call_operand.vmem [shape: f32[1,64], index: 3, kind: input, shape index: {}]   ;;  %s1358_s4 = inlined_call_operand.<no memory space> [shape: f32[1], index: 4, kind: input, shape index: {}]   ;;  %s1359_s5 = inlined_call_operand.hbm [shape: f32[1,2], index: 5, kind: output, shape index: {}]  }
   0x1   :  { %12 = vsyncpa [#allocation5], 0  ;;  %s1126_s18 = smov [#allocation3]   ;;  %s1078_s22 = scalar_lea.hbm %s1354_s0, 320 }
   0x2   :  { %s18_s19 = sshll.u32 %s1126_s18, 4  ;;  %p1079_p0 = scmp.ne.s32.totalorder %s1354_s0, %s1078_s22  ;;  %s19_s19 = int_to_ptr.vmem [resolvable:$true] %s18_s19 }
   0x3   :  { %p1082_p1 = scmp.lt.u32.totalorder %s1078_s22, %s1354_s0 }
   0x5   :  { %p1084_p2 = pnand %p1082_p1, %p1079_p0 }
   0x7   :  { %1087 = shalt.err (!%p1084_p2)
}
   0x8   :  { %s1088_s27 = scalar_lea.vmem %s19_s19, 320  ;;  %p1093_p4 = scmp.lt.s32.totalorder %s19_s19, %s19_s19 }
   0x9   :  { %p1089_p3 = scmp.ne.s32.totalorder %s19_s19, %s1088_s27  ;;  %p1094_p5 = scmp.lt.s32.totalorder %s1088_s27, %s1088_s27 }
   0xb   :  { %p1095_p6 = por %p1094_p5, %p1093_p4 }
   0xd   :  { %p1096_p7 = pnand %p1095_p6, %p1089_p3 }
   0xf   :  { %1099 = shalt.err (!%p1096_p7)
}
  0x10   :  { %s1127_s28 = smov 32   ;;  %s1128_s29 = smov 2  }
  0x11   :  { %24 = dma.hbm_to_vmem [thread:$0]  %s1354_s0, 320, %s19_s19, [#allocation4], %s1127_s28, %s1127_s28, %s1128_s29  }
  0x12   :  { %1122 = dma.done.wait [#allocation4], 320  }
  0x13   :  { %1123 = vsyncadd [#allocation4], 4294966976  ;;  %v46_v0 = vld [vmem:[#allocation3 + $0x2] sm:$0x3]  ;;  %v1180_v1 = vld [vmem:[#allocation3 + $0x6] sm:$0x3] }
  0x14   :  { %52 = vrot.lane.b32.xlu0 %v46_v0, %s1127_s28  ;;  %s1129_s7 = smov 96   ;;  %v1185_v2 = vld [vmem:[#allocation3 + $0x4] sm:$0x3]  ;;  %s1130_s0 = smov 64   ;;  %v1197_v4 = vld [vmem:[#allocation3 + $0x8] sm:$0x3] }
  0x15   :  { %60 = vrot.lane.b32.xlu1 %v1180_v1, %s1129_s7  ;;  %v1190_v3 = vld [vmem:[%s1355_s1] sm:$0xff]  ;;  %v1205_v5 = vld [vmem:[#allocation3 + $0xa] sm:$0x3]  ;;  %v1211_v6 = vld [vmem:[#allocation3 + $0xc] sm:$0x3]  ;;  %v1131_v10 = vmov 0  }
  0x16   :  { %977 = vmatprep.mubr.f32.mxu0 %v1190_v3  ;;  %985 = vmatprep.mubr.f32.mxu1 %v1190_v3  ;;  %v507_v7 = vld [vmem:[#allocation3 + $0xe] sm:$0x3]  ;;  %v615_v8 = vld [vmem:[#allocation3 + $0x10] sm:$0x3]  ;;  %v723_v9 = vld [vmem:[#allocation3 + $0x12] sm:$0x3] }
  0x17   :  { %1072 = vset.pattern.permute.xlu1 %v1131_v10  ;;  %v40_v11 = vld [vmem:[%s1356_s2] sm:$0xff]  ;;  %1073 = vset.pattern.permute.xlu0 %v1131_v10  ;;  %v42_v12 = vld [vmem:[%s1356_s2 + $0x10] sm:$0xff]  ;;  %v41_v13 = vld [vmem:[%s1356_s2 + $0x8] sm:$0xff]  ;;  %vm63_vm0 = vcmask 261120   ;;  %vm65_vm1 = vcmask 523264   ;;  %vm67_vm2 = vcmask 785408  }
  0x18   :  { %56 = vrot.lane.b32.xlu0 %v1185_v2, %s1130_s0  ;;  %v43_v14 = vld [vmem:[%s1356_s2 + $0x18] sm:$0xff]  ;;  %v44_v17 = vld [vmem:[#allocation3] sm:$0x3]  ;;  %v1244_v26 = vld [vmem:[%s1355_s1 + $0x8] sm:$0xff]  ;;  %v1132_v61 = vmov 0.0|0.0   ;;  %vm1133_vm3 = vmmov 0  }
  0x19   :  { %184 = vrot.lane.b32.xlu1 %v1185_v2, %s1127_s28  ;;  %v1250_v28 = vld [vmem:[%s1355_s1 + $0x10] sm:$0xff]  ;;  %v39_v32 = vld [vmem:[%s1355_s1 + $0x18] sm:$0xff]  ;;  %v1134_v62 = vmov 0.0   ;;  %s1135_s26 = smov [#allocation6]   ;;  %vm912_vm4 = vcmask 8192  }
  0x1a   :  { %s920_s27 = sshll.u32 %s1135_s26, 4  ;;  %s921_s27 = int_to_ptr.vmem [resolvable:$true] %s920_s27 }
  0x1b   :  { %p1105_p9 = scmp.lt.s32.totalorder %s921_s27, %s921_s27 }
  0x1c   :  { %187 = vrot.lane.b32.xlu0 %v1180_v1, %s1130_s0 }
  0x1d   :  { %191 = vrot.lane.b32.xlu1 %v1197_v4, %s1129_s7 }
  0x20   :  { %292 = vrot.lane.b32.xlu0 %v1180_v1, %s1127_s28 }
  0x21   :  { %295 = vrot.lane.b32.xlu1 %v1197_v4, %s1130_s0 }
  0x24   :  { %299 = vrot.lane.b32.xlu0 %v1205_v5, %s1129_s7 }
  0x25   :  { %400 = vrot.lane.b32.xlu1 %v1197_v4, %s1127_s28 }
  0x28   :  { %403 = vrot.lane.b32.xlu0 %v1205_v5, %s1130_s0 }
  0x29   :  { %407 = vrot.lane.b32.xlu1 %v1211_v6, %s1129_s7 }
  0x2c   :  { %508 = vrot.lane.b32.xlu0 %v1205_v5, %s1127_s28 }
  0x2d   :  { %511 = vrot.lane.b32.xlu1 %v1211_v6, %s1130_s0 }
  0x30   :  { %515 = vrot.lane.b32.xlu0 %v507_v7, %s1129_s7 }
  0x31   :  { %616 = vrot.lane.b32.xlu1 %v1211_v6, %s1127_s28 }
  0x34   :  { %619 = vrot.lane.b32.xlu0 %v507_v7, %s1130_s0 }
  0x35   :  { %623 = vrot.lane.b32.xlu1 %v615_v8, %s1129_s7 }
  0x38   :  { %724 = vrot.lane.b32.xlu0 %v507_v7, %s1127_s28  ;;  %s1104_s28 = scalar_lea.vmem %s921_s27, 32 }
  0x39   :  { %727 = vrot.lane.b32.xlu1 %v615_v8, %s1130_s0 }
  0x3c   :  { %731 = vrot.lane.b32.xlu0 %v723_v9, %s1129_s7 }
  0x3d   :  { %71 = vperm.xlu1 %1072, %v40_v11  }
  0x40   :  { %76 = vperm.xlu0 %1073, %v41_v13  }
  0x41   :  { %81 = vperm.xlu1 %1072, %v42_v12  }
  0x45   :  { %86 = vperm.xlu1 %1072, %v43_v14  }
  0x86   :  { %v53_v15 = vpop.permute.xlu0 %52 }
  0x87   :  { %v61_v16 = vpop.permute.xlu1 %60  ;;  %v64_v18 = vsel %vm63_vm0, %v44_v17, %v53_v15 }
  0x8a   :  { %v57_v19 = vpop.permute.xlu0 %56 }
  0x8b   :  { %v185_v20 = vpop.permute.xlu1 %184  ;;  %v66_v21 = vsel %vm65_vm1, %v64_v18, %v57_v19 }
  0x8c   :  { %v194_v22 = vsel %vm63_vm0, %v46_v0, %v185_v20  ;;  %v68_v23 = vsel %vm67_vm2, %v66_v21, %v61_v16 }
  0x8d   :  { %975 = vmatprep.subr.mxu0 %v68_v23 }
  0x8e   :  { %v188_v24 = vpop.permute.xlu0 %187  ;;  %976 = vmatpush3.xpose.msra.mxu0 %v68_v23 }
  0x8f   :  { %v192_v25 = vpop.permute.xlu1 %191  ;;  %v195_v27 = vsel %vm65_vm1, %v194_v22, %v188_v24 }
  0x90   :  { %v196_v29 = vsel %vm67_vm2, %v195_v27, %v192_v25 }
  0x91   :  { %983 = vmatprep.subr.mxu1 %v196_v29  ;;  %978 = vmatmul.mubr.f32.vlgmr.msra.gmra.mrb[0].mxu0 %v1244_v26 }
  0x92   :  { %v293_v30 = vpop.permute.xlu0 %292  ;;  %984 = vmatpush3.xpose.msra.mxu1 %v196_v29  ;;  %980 = vmatprep.mubr.f32.mxu0 %v1250_v28 }
  0x93   :  { %v296_v31 = vpop.permute.xlu1 %295  ;;  %v302_v33 = vsel %vm63_vm0, %v1185_v2, %v293_v30 }
  0x94   :  { %v303_v34 = vsel %vm65_vm1, %v302_v33, %v296_v31 }
  0x95   :  { %981 = vmatmul.mubr.f32.gmra.mrb[2].mxu0 %v39_v32  ;;  %986 = vmatmul.mubr.f32.vlgmr.msra.gmra.mrb[0].mxu1 %v1244_v26 }
  0x96   :  { %v300_v35 = vpop.permute.xlu0 %299  ;;  %993 = vmatprep.mubr.f32.mxu0 %v1190_v3  ;;  %988 = vmatprep.mubr.f32.mxu1 %v1250_v28 }
  0x97   :  { %v401_v36 = vpop.permute.xlu1 %400  ;;  %v304_v37 = vsel %vm67_vm2, %v303_v34, %v300_v35 }
  0x98   :  { %v410_v38 = vsel %vm63_vm0, %v1180_v1, %v401_v36  ;;  %991 = vmatprep.subr.mxu0 %v304_v37 }
  0x99   :  { %992 = vmatpush3.xpose.msra.mxu0 %v304_v37  ;;  %989 = vmatmul.mubr.f32.gmra.mrb[2].mxu1 %v39_v32 }
  0x9a   :  { %v404_v39 = vpop.permute.xlu0 %403  ;;  %1001 = vmatprep.mubr.f32.mxu1 %v1190_v3 }
  0x9b   :  { %v408_v40 = vpop.permute.xlu1 %407  ;;  %v411_v41 = vsel %vm65_vm1, %v410_v38, %v404_v39 }
  0x9c   :  { %v412_v42 = vsel %vm67_vm2, %v411_v41, %v408_v40  ;;  %994 = vmatmul.mubr.f32.vlgmr.msra.gmra.mrb[4].mxu0 %v1244_v26 }
  0x9d   :  { %999 = vmatprep.subr.mxu1 %v412_v42  ;;  %996 = vmatprep.mubr.f32.mxu0 %v1250_v28 }
  0x9e   :  { %v509_v43 = vpop.permute.xlu0 %508  ;;  %1000 = vmatpush3.xpose.msra.mxu1 %v412_v42 }
  0x9f   :  { %v512_v44 = vpop.permute.xlu1 %511  ;;  %v518_v45 = vsel %vm63_vm0, %v1197_v4, %v509_v43 }
  0xa0   :  { %997 = vmatmul.mubr.f32.gmra.mrb[6].mxu0 %v39_v32  ;;  %v519_v46 = vsel %vm65_vm1, %v518_v45, %v512_v44 }
  0xa1   :  { %1002 = vmatmul.mubr.f32.vlgmr.msra.gmra.mrb[4].mxu1 %v1244_v26  ;;  %1009 = vmatprep.mubr.f32.mxu0 %v1190_v3 }
  0xa2   :  { %v516_v47 = vpop.permute.xlu0 %515  ;;  %1004 = vmatprep.mubr.f32.mxu1 %v1250_v28 }
  0xa3   :  { %v617_v48 = vpop.permute.xlu1 %616  ;;  %v520_v49 = vsel %vm67_vm2, %v519_v46, %v516_v47 }
  0xa4   :  { %v626_v50 = vsel %vm63_vm0, %v1205_v5, %v617_v48  ;;  %1007 = vmatprep.subr.mxu0 %v520_v49 }
  0xa5   :  { %1008 = vmatpush3.xpose.msra.mxu0 %v520_v49  ;;  %1005 = vmatmul.mubr.f32.gmra.mrb[6].mxu1 %v39_v32 }
  0xa6   :  { %v620_v51 = vpop.permute.xlu0 %619  ;;  %1017 = vmatprep.mubr.f32.mxu1 %v1190_v3 }
  0xa7   :  { %v624_v52 = vpop.permute.xlu1 %623  ;;  %v627_v53 = vsel %vm65_vm1, %v626_v50, %v620_v51 }
  0xa8   :  { %1010 = vmatmul.mubr.f32.vlgmr.msra.gmra.mrb[8].mxu0 %v1244_v26  ;;  %v628_v54 = vsel %vm67_vm2, %v627_v53, %v624_v52 }
  0xa9   :  { %1015 = vmatprep.subr.mxu1 %v628_v54  ;;  %1012 = vmatprep.mubr.f32.mxu0 %v1250_v28 }
  0xaa   :  { %v725_v55 = vpop.permute.xlu0 %724  ;;  %1016 = vmatpush3.xpose.msra.mxu1 %v628_v54 }
  0xab   :  { %v734_v56 = vsel %vm63_vm0, %v1211_v6, %v725_v55  ;;  %v728_v57 = vpop.permute.xlu1 %727  ;;  %1050 = vmatprep.subr.bf16.mxu1 %v1132_v61 }
  0xac   :  { %1013 = vmatmul.mubr.f32.gmra.mrb[10].mxu0 %v39_v32  ;;  %v735_v58 = vsel %vm65_vm1, %v734_v56, %v728_v57 }
  0xad   :  { %1018 = vmatmul.mubr.f32.vlgmr.msra.gmra.mrb[8].mxu1 %v1244_v26  ;;  %1025 = vmatprep.mubr.f32.mxu0 %v1190_v3 }
  0xae   :  { %v732_v59 = vpop.permute.xlu0 %731  ;;  %1020 = vmatprep.mubr.f32.mxu1 %v1250_v28 }
  0xaf   :  { %v736_v60 = vsel %vm67_vm2, %v735_v58, %v732_v59 }
  0xb0   :  { %1023 = vmatprep.subr.mxu0 %v736_v60 }
  0xb1   :  { %1021 = vmatmul.mubr.f32.gmra.mrb[10].mxu1 %v39_v32  ;;  %1024 = vmatpush3.xpose.msra.mxu0 %v736_v60 }
  0xb2   :  { %1047 = vmatprep.mubr.msk.f32.mxu1 %vm1133_vm3, %v1134_v62 }
  0xb4   :  { %1026 = vmatmul.mubr.f32.vlgmr.msra.gmra.mrb[12].mxu0 %v1244_v26 }
  0xb5   :  { %1028 = vmatprep.mubr.f32.mxu0 %v1250_v28 }
  0xb8   :  { %1029 = vmatmul.mubr.f32.gmra.mrb[14].mxu0 %v39_v32 }
  0xbc   :  { %v1296_v63 = vpop.permute.xlu1 %71 }
  0xbf   :  { %v1300_v1 = vpop.permute.xlu0 %76 }
  0xc0   :  { %v1298_v0 = vpop.permute.xlu1 %81 }
  0xc4   :  { %v1304_v6 = vpop.permute.xlu1 %86 }
 0x164   :  { %v979_v2 = vpop.f32.mrb[0].mxu0 }
 0x165   :  { %v155_v3 = vpop.f32.mrb[1].mxu0  ;;  %v161_v4 = vadd.f32 %v979_v2, %v1300_v1 }
 0x166   :  { %v156_v5 = vadd.f32 %v155_v3, %v1296_v63 }
 0x167   :  { %v175_v7 = vmax.f32 %v161_v4, 0.0 }
 0x168   :  { %v174_v8 = vmax.f32 %v156_v5, 0.0  ;;  %v982_v9 = vpop.f32.mrb[2].mxu0  ;;  %v987_v10 = vpop.f32.mrb[0].mxu1 }
 0x169   :  { %v179_v11 = vmax.f32 %v175_v7, 0.0  ;;  %v269_v12 = vadd.f32 %v987_v10, %v1300_v1  ;;  %v165_v13 = vpop.f32.mrb[3].mxu0  ;;  %v263_v14 = vpop.f32.mrb[1].mxu1  ;;  %v171_v15 = vadd.f32 %v982_v9, %v1304_v6 }
 0x16a   :  { %v178_v16 = vmax.f32 %v174_v8, 0.0  ;;  %v166_v17 = vadd.f32 %v165_v13, %v1298_v0  ;;  %v264_v18 = vadd.f32 %v263_v14, %v1296_v63 }
 0x16b   :  { %v283_v19 = vmax.f32 %v269_v12, 0.0  ;;  %v177_v20 = vmax.f32 %v171_v15, 0.0 }
 0x16c   :  { %v176_v21 = vmax.f32 %v166_v17, 0.0  ;;  %v282_v22 = vmax.f32 %v264_v18, 0.0  ;;  %v990_v23 = vpop.f32.mrb[2].mxu1 }
 0x16d   :  { %v287_v24 = vmax.f32 %v179_v11, %v283_v19  ;;  %v181_v25 = vmax.f32 %v177_v20, 0.0  ;;  %v279_v26 = vadd.f32 %v990_v23, %v1304_v6  ;;  %v273_v27 = vpop.f32.mrb[3].mxu1 }
 0x16e   :  { %v180_v28 = vmax.f32 %v176_v21, 0.0  ;;  %v286_v29 = vmax.f32 %v178_v16, %v282_v22  ;;  %v274_v30 = vadd.f32 %v273_v27, %v1298_v0 }
 0x16f   :  { %v285_v31 = vmax.f32 %v279_v26, 0.0  ;;  %v995_v32 = vpop.f32.mrb[4].mxu0 }
 0x170   :  { %v377_v33 = vadd.f32 %v995_v32, %v1300_v1  ;;  %v284_v34 = vmax.f32 %v274_v30, 0.0  ;;  %v371_v35 = vpop.f32.mrb[5].mxu0 }
 0x171   :  { %v289_v36 = vmax.f32 %v181_v25, %v285_v31  ;;  %v372_v37 = vadd.f32 %v371_v35, %v1296_v63 }
 0x172   :  { %v391_v38 = vmax.f32 %v377_v33, 0.0  ;;  %v288_v39 = vmax.f32 %v180_v28, %v284_v34 }
 0x173   :  { %v390_v40 = vmax.f32 %v372_v37, 0.0  ;;  %v998_v41 = vpop.f32.mrb[6].mxu0 }
 0x174   :  { %v395_v42 = vmax.f32 %v287_v24, %v391_v38  ;;  %v387_v43 = vadd.f32 %v998_v41, %v1304_v6  ;;  %v1003_v44 = vpop.f32.mrb[4].mxu1  ;;  %v381_v45 = vpop.f32.mrb[7].mxu0 }
 0x175   :  { %v394_v46 = vmax.f32 %v286_v29, %v390_v40  ;;  %v485_v47 = vadd.f32 %v1003_v44, %v1300_v1  ;;  %v382_v48 = vadd.f32 %v381_v45, %v1298_v0  ;;  %v479_v49 = vpop.f32.mrb[5].mxu1 }
 0x176   :  { %v393_v50 = vmax.f32 %v387_v43, 0.0  ;;  %v480_v51 = vadd.f32 %v479_v49, %v1296_v63 }
 0x177   :  { %v499_v52 = vmax.f32 %v485_v47, 0.0  ;;  %v392_v53 = vmax.f32 %v382_v48, 0.0 }
 0x178   :  { %v397_v54 = vmax.f32 %v289_v36, %v393_v50  ;;  %v498_v55 = vmax.f32 %v480_v51, 0.0  ;;  %v1006_v56 = vpop.f32.mrb[6].mxu1 }
 0x179   :  { %v503_v57 = vmax.f32 %v395_v42, %v499_v52  ;;  %v396_v58 = vmax.f32 %v288_v39, %v392_v53  ;;  %v495_v59 = vadd.f32 %v1006_v56, %v1304_v6  ;;  %v489_v60 = vpop.f32.mrb[7].mxu1 }
 0x17a   :  { %v502_v62 = vmax.f32 %v394_v46, %v498_v55  ;;  %v490_v2 = vadd.f32 %v489_v60, %v1298_v0 }
 0x17b   :  { %v1011_v3 = vpop.f32.mrb[8].mxu0  ;;  %v501_v4 = vmax.f32 %v495_v59, 0.0 }
 0x17c   :  { %v593_v5 = vadd.f32 %v1011_v3, %v1300_v1  ;;  %v587_v7 = vpop.f32.mrb[9].mxu0  ;;  %v500_v8 = vmax.f32 %v490_v2, 0.0 }
 0x17d   :  { %v505_v9 = vmax.f32 %v397_v54, %v501_v4  ;;  %v588_v10 = vadd.f32 %v587_v7, %v1296_v63 }
 0x17e   :  { %v607_v11 = vmax.f32 %v593_v5, 0.0  ;;  %v504_v12 = vmax.f32 %v396_v58, %v500_v8 }
 0x17f   :  { %v606_v13 = vmax.f32 %v588_v10, 0.0  ;;  %v1014_v14 = vpop.f32.mrb[10].mxu0 }
 0x180   :  { %v611_v15 = vmax.f32 %v503_v57, %v607_v11  ;;  %v603_v16 = vadd.f32 %v1014_v14, %v1304_v6  ;;  %v597_v17 = vpop.f32.mrb[11].mxu0  ;;  %v1019_v18 = vpop.f32.mrb[8].mxu1 }
 0x181   :  { %v610_v19 = vmax.f32 %v502_v62, %v606_v13  ;;  %v598_v20 = vadd.f32 %v597_v17, %v1298_v0  ;;  %v701_v21 = vadd.f32 %v1019_v18, %v1300_v1  ;;  %v695_v22 = vpop.f32.mrb[9].mxu1 }
 0x182   :  { %v609_v23 = vmax.f32 %v603_v16, 0.0  ;;  %v696_v24 = vadd.f32 %v695_v22, %v1296_v63 }
 0x183   :  { %v1057_v25 = vpack.c.bf16 %v611_v15, %v610_v19  ;;  %v608_v26 = vmax.f32 %v598_v20, 0.0  ;;  %v715_v27 = vmax.f32 %v701_v21, 0.0 }
 0x184   :  { %v613_v28 = vmax.f32 %v505_v9, %v609_v23  ;;  %v714_v29 = vmax.f32 %v696_v24, 0.0  ;;  %v1022_v30 = vpop.f32.mrb[10].mxu1 }
 0x185   :  { %v612_v31 = vmax.f32 %v504_v12, %v608_v26  ;;  %v719_v32 = vmax.f32 %v611_v15, %v715_v27  ;;  %v711_v33 = vadd.f32 %v1022_v30, %v1304_v6  ;;  %v705_v34 = vpop.f32.mrb[11].mxu1 }
 0x186   :  { %v718_v35 = vmax.f32 %v610_v19, %v714_v29  ;;  %v706_v36 = vadd.f32 %v705_v34, %v1298_v0 }
 0x187   :  { %v1060_v37 = vpack.c.bf16 %v613_v28, %v612_v31  ;;  %v717_v38 = vmax.f32 %v711_v33, 0.0  ;;  %v1027_v39 = vpop.f32.mrb[12].mxu0 }
 0x188   :  { %v716_v40 = vmax.f32 %v706_v36, 0.0  ;;  %v809_v41 = vadd.f32 %v1027_v39, %v1300_v1  ;;  %v803_v42 = vpop.f32.mrb[13].mxu0 }
 0x189   :  { %v721_v43 = vmax.f32 %v613_v28, %v717_v38  ;;  %v804_v44 = vadd.f32 %v803_v42, %v1296_v63 }
 0x18a   :  { %v720_v45 = vmax.f32 %v612_v31, %v716_v40  ;;  %v823_v46 = vmax.f32 %v809_v41, 0.0 }
 0x18b   :  { %v822_v47 = vmax.f32 %v804_v44, 0.0  ;;  %v1030_v48 = vpop.f32.mrb[14].mxu0 }
 0x18c   :  { %v827_v49 = vmax.f32 %v719_v32, %v823_v46  ;;  %v819_v50 = vadd.f32 %v1030_v48, %v1304_v6  ;;  %v813_v51 = vpop.f32.mrb[15].mxu0  ;;  %v832_v6 = vstv %s1358_s4 }
 0x18d   :  { %v826_v52 = vmax.f32 %v718_v35, %v822_v47  ;;  %v814_v53 = vadd.f32 %v813_v51, %v1298_v0  ;;  %v830_v0 = vld [vmem:[%s1357_s3] sm:$0x1]  ;;  %s1100_s3 = scalar_lea.vmem %s921_s27, 16 }
 0x18e   :  { %v825_v54 = vmax.f32 %v819_v50, 0.0  ;;  %p1101_p8 = scmp.ne.s32.totalorder %s921_s27, %s1100_s3  ;;  %p1106_p10 = scmp.lt.s32.totalorder %s1104_s28, %s1100_s3 }
 0x18f   :  { %v1051_v55 = vpack.c.bf16 %v827_v49, %v826_v52  ;;  %v824_v56 = vmax.f32 %v814_v53, 0.0 }
 0x190   :  { %v829_v57 = vmax.f32 %v721_v43, %v825_v54  ;;  %p1107_p11 = por %p1106_p10, %p1105_p9 }
 0x191   :  { %v828_v1 = vmax.f32 %v720_v45, %v824_v56  ;;  %1052 = vmatpush3.bf16.msra.mxu1 %v1051_v55 }
 0x192   :  { %1053 = vmatprep.subr.bf16.mxu1 %v1132_v61  ;;  %p1108_p12 = pnand %p1107_p11, %p1101_p8 }
 0x193   :  { %v1054_v63 = vpack.c.bf16 %v829_v57, %v828_v1 }
 0x195   :  { %1055 = vmatpush3.bf16.msra.mxu1 %v1054_v63 }
 0x196   :  { %1056 = vmatprep.subr.bf16.mxu1 %v1132_v61 }
 0x199   :  { %1058 = vmatpush3.bf16.msra.mxu1 %v1057_v25 }
 0x19a   :  { %1059 = vmatprep.subr.bf16.mxu1 %v1132_v61 }
 0x19d   :  { %1061 = vmatpush3.bf16.msra.mxu1 %v1060_v37 }
 0x1a0   :  { %1048 = vmatmul.mubr.msk.f32.vlgmr.msra.gmra.mrb[12].mxu1 %vm65_vm1, %v830_v0 }
 0x273   :  { %v902_v58 = vpop.f32.mrb[12].mxu1 }
 0x274   :  { %v903_v59 = vadd.f32 %v902_v58, %v832_v6  ;;  %v1049_v60 = vpop.f32.mrb[13].mxu1 }
 0x276   :  { %v930_v62 = vmul.f32 -1.442695, %v903_v59 }
 0x278   :  { %1074 = vpow2.f32 %v930_v62 }
 0x282   :  { %v1075_v2 = vpop.eup %1074 }
 0x283   :  { %v909_v3 = vadd.f32 1.0, %v1075_v2 }
 0x285   :  { %1076 = vrcp.f32 %v909_v3 }
 0x28f   :  { %v1077_v61 = vpop.eup %1076 }
 0x290   :  { %913 = vst.msk [vmem:[#allocation6] sm:$0x1] %vm912_vm4, %v1077_v61 }
 0x291   :  { %1111 = shalt.err (!%p1108_p12)
}
 0x292   :  { %s1112_s30 = scalar_lea.hbm %s1359_s5, 16 }
 0x293   :  { %p1113_p13 = scmp.ne.s32.totalorder %s1359_s5, %s1112_s30  ;;  %p1116_p0 = scmp.lt.u32.totalorder %s1112_s30, %s1359_s5 }
 0x295   :  { %p1118_p1 = pnand %p1116_p0, %p1113_p13 }
 0x297   :  { %1121 = shalt.err (!%p1118_p1)
}
 0x298   :  { %923 = dma.vmem_to_hbm [thread:$0]  %s921_s27, 16, %s1359_s5, [#allocation5]  }
 0x299   :  { %1124 = dma.done.wait [#allocation5], 16  }
 0x29a   :  { %1125 = vsyncadd [#allocation5], 4294967280 }
 0x29b   :  { %927 = vsyncpa [#allocation4], 1 }
 0x29c   :  { %928 = vsyncpa [#allocation5], 1 }

</bundles_post_ra>
